<compile_context>
chip_gen: v7x
topology: tpu7x:2x2x1
jax: 0.10.0
libtpu: 0.0.40
codegen_flags: <defaults>
</compile_context>

<pallas_src>
import math
import numpy as np

import jax
import jax.numpy as jnp
from jax import lax
from jax.experimental import pallas as pl
from jax.experimental.pallas import tpu as pltpu

LANES = 128
MAX_TILE_B = 128                  # review: 256 spills (h2 = 256x640 f32); keep >=128 tiles
IN0, H1, H2 = 128, 512, 640       # lane-padded widths: 16->128, 16*5*5=400->512, 16*6*6=576->640


def _round_up(n, m):
    return (n + m - 1) // m * m


# ----------------- structural (data-independent) matrices, host-side -----------------

def _conv_spatial_placement(hin, win):
    """P[dy*2+dx, s_in, s_out] = 1 iff a k=2/s=1/p=1 conv output (y,x) reads input
    position s_in at kernel offset (dy,dx)."""
    ho, wo = hin + 1, win + 1
    P = np.zeros((4, hin * win, ho * wo), np.float32)
    for dy in range(2):
        for dx in range(2):
            k = dy * 2 + dx
            for y in range(ho):
                for x in range(wo):
                    i, j = y + dy - 1, x + dx - 1
                    if 0 <= i < hin and 0 <= j < win:
                        P[k, i * win + j, y * wo + x] = 1.0
    return P


def conv_as_dense(w, hin, win):
    """w: [Cout, Cin, 2, 2] (OIHW) -> dense [Cin*hin*win, Cout*(hin+1)*(win+1)]
    realizing Conv2d(k=2, s=1, p=1) on channel-major-flattened activations."""
    cout, cin = w.shape[0], w.shape[1]
    P = _conv_spatial_placement(hin, win)                    # [4, Sin, Sout]
    wk = np.asarray(w, np.float32).reshape(cout, cin, 4)     # k = dy*2 + dx
    M = np.einsum('kst,oik->isot', P, wk)                    # [Cin, Sin, Cout, Sout]
    return M.reshape(cin * hin * win, cout * (hin + 1) * (win + 1))


def _pool_base_rows(base_off):
    """Flat indices (16x6x6 channel-major layout) where the 2x2/s=1 window max for
    pooled output (c, y, x) lands, ordered like the PyTorch flatten c*25+y*5+x.
    base_off=0: window top-left corner; base_off=1: window bottom-right corner."""
    rows = []
    for c in range(16):
        for y in range(5):
            for x in range(5):
                rows.append(c * 36 + (y + base_off) * 6 + (x + base_off))
    return np.asarray(rows, np.int64)


# ----------------------- roll-direction probe (runs one tiny kernel) ------------------

_POOL_BASE_OFF = None


def pool_base_offset():
    """The kernel always rolls by (1, 6); whether the window max lands at the window's
    top-left or bottom-right flat index depends on pltpu.roll's rotation convention.
    Probe it once and let the host-side row embedding (m3 / wfc) adapt."""
    global _POOL_BASE_OFF
    if _POOL_BASE_OFF is None:
        def probe(x_ref, o_ref):
            o_ref[...] = pltpu.roll(x_ref[...], 1, axis=1)

        x = lax.broadcasted_iota(jnp.float32, (8, LANES), 1)
        out = pl.pallas_call(
            probe, out_shape=jax.ShapeDtypeStruct((8, LANES), jnp.float32))(x)
        # np.roll convention (result[i] = x[i-1]) -> max lands at the bottom-right base.
        _POOL_BASE_OFF = 1 if float(out[0, 1]) == 0.0 else 0
    return _POOL_BASE_OFF


# --------------------------------- Pallas kernel -------------------------------------

def convnet_kernel(x_ref, m1_ref, c1_ref, m2_ref, c2_ref, m3_ref, c3_ref,
                   wfc_ref, bfc_ref, o_ref):
    f32, bf16 = jnp.float32, jnp.bfloat16

    def mm(a, w_ref):                       # MXU: bf16 x bf16 -> f32 accumulate
        return jnp.dot(a.astype(bf16), w_ref[...], preferred_element_type=f32)

    def pool(h):
        # MaxPool2d(k=2, s=1) on the channel-major 16x6x6 activation (lane-padded to
        # 640): window max = max over flat offsets {0,1,6,7} (or {0,-1,-6,-7},
        # depending on roll convention).  2 XLU rolls + 2 VPU maxes; the valid 5x5
        # bases are selected by zero/nonzero rows of the NEXT weight matrix, so
        # wrapped / cross-boundary lanes are simply never read.
        hm = jnp.maximum(h, pltpu.roll(h, 1, axis=1))        # horizontal pair max
        return jnp.maximum(hm, pltpu.roll(hm, 6, axis=1))    # + vertical pair max

    x = x_ref[...]                                                   # [TB, 128]
    h1 = jnp.maximum(mm(x, m1_ref) + c1_ref[...], 0.0)               # [TB, 512] conv1+relu
    h2 = jnp.maximum(mm(h1, m2_ref) + c2_ref[...], 0.0)              # [TB, 640] conv2+relu
    h3 = jnp.maximum(mm(pool(h2), m3_ref) + c3_ref[...], 0.0)        # [TB, 640] pool+conv3+relu
    logits = mm(pool(h3), wfc_ref) + bfc_ref[...]                    # [TB, 128] pool+fc
    m = jnp.max(logits, axis=1, keepdims=True)                       # padded cols carry -1e30 bias
    e = jnp.exp(logits - m)
    denom = jnp.sum(e, axis=1, keepdims=True)
    o_ref[...] = (e * pl.reciprocal(denom, approx=True)).astype(o_ref.dtype)


# ------------------------------------ wrapper -----------------------------------------

def init_torch_like_params(key, num_actions):
    """PyTorch-layout params with nn default-style uniform(+-1/sqrt(fan_in)) init."""
    ks = jax.random.split(key, 8)

    def u(k, shape, fan_in):
        b = 1.0 / math.sqrt(fan_in)
        return jax.random.uniform(k, shape, jnp.float32, -b, b)

    w1, b1 = u(ks[0], (16, 1, 2, 2), 4),   u(ks[1], (16,), 4)
    w2, b2 = u(ks[2], (16, 16, 2, 2), 64), u(ks[3], (16,), 64)
    w3, b3 = u(ks[4], (16, 16, 2, 2), 64), u(ks[5], (16,), 64)
    wfc, bfc = u(ks[6], (400, num_actions), 400), u(ks[7], (num_actions,), 400)  # [in, out]
    return w1, b1, w2, b2, w3, b3, wfc, bfc


def lower_params(raw, num_actions, pool_base_off):
    """Kernel operands: lane-padded dense conv matrices (bf16 MXU operands), f32
    biases, and the pool valid-row selection folded into m3 / wfc."""
    w1, b1, w2, b2, w3, b3, wfc, bfc = (np.asarray(a, np.float32) for a in raw)

    m1 = conv_as_dense(w1, 4, 4)             # [16,  400]
    m2 = conv_as_dense(w2, 5, 5)             # [400, 576]
    m3 = conv_as_dense(w3, 5, 5)             # [400, 576]
    rows = _pool_base_rows(pool_base_off)    # 400 valid pooled positions in the 576 layout

    m1p = np.zeros((IN0, H1), np.float32); m1p[:16, :400] = m1
    c1p = np.zeros((1, H1), np.float32);   c1p[0, :400] = np.repeat(b1, 25)

    m2p = np.zeros((H1, H2), np.float32);  m2p[:400, :576] = m2
    c2p = np.zeros((1, H2), np.float32);   c2p[0, :576] = np.repeat(b2, 36)

    m3p = np.zeros((H2, H2), np.float32);  m3p[rows, :576] = m3     # reads pooled activation
    c3p = np.zeros((1, H2), np.float32);   c3p[0, :576] = np.repeat(b3, 36)

    a_pad = max(LANES, _round_up(num_actions, LANES))
    wfcp = np.zeros((H2, a_pad), np.float32); wfcp[rows, :num_actions] = wfc
    bfcp = np.full((1, a_pad), -1e30, np.float32); bfcp[0, :num_actions] = bfc

    bf = lambda a: jnp.asarray(a, jnp.bfloat16)    # MXU operands (structural 0s exact)
    f32 = lambda a: jnp.asarray(a, jnp.float32)    # biases stay f32
    return (bf(m1p), f32(c1p), bf(m2p), f32(c2p), bf(m3p), f32(c3p), bf(wfcp), f32(bfcp))


def convnet_forward(state, lowered, num_actions):
    """state: [B, 1, 4, 4] float32 -> [B, num_actions] action probabilities."""
    m1, c1, m2, c2, m3, c3, wfc, bfc = lowered
    B = state.shape[0]
    a_pad = wfc.shape[1]

    x = state.astype(jnp.float32).reshape(B, -1)             # channel-major flatten -> [B, 16]

    # Batch tiling: aim for >=2 grid steps so ("parallel",) can shard the batch
    # across v7x's two TensorCores; tiles stay within [8, MAX_TILE_B].
    b8 = _round_up(B, 8)
    tile_b = max(8, min(MAX_TILE_B, _round_up(b8 // 2, 8)))
    b_pad = _round_up(B, tile_b)
    x = jnp.pad(x, ((0, b_pad - B), (0, IN0 - x.shape[1])))   # pad batch + features 16->128

    const = lambda i: (0, 0)
    out = pl.pallas_call(
        convnet_kernel,
        out_shape=jax.ShapeDtypeStruct((b_pad, a_pad), jnp.float32),
        grid=(b_pad // tile_b,),
        in_specs=[
            pl.BlockSpec((tile_b, IN0), lambda i: (i, 0)),    # batch tile of inputs
            pl.BlockSpec(m1.shape, const),                    # weights: VMEM-resident
            pl.BlockSpec(c1.shape, const),
            pl.BlockSpec(m2.shape, const),
            pl.BlockSpec(c2.shape, const),
            pl.BlockSpec(m3.shape, const),
            pl.BlockSpec(c3.shape, const),
            pl.BlockSpec(wfc.shape, const),
            pl.BlockSpec(bfc.shape, const),
        ],
        out_specs=pl.BlockSpec((tile_b, a_pad), lambda i: (i, 0)),
        compiler_params=pltpu.CompilerParams(
            dimension_semantics=("parallel",),
            # bf16 weights (~1.8 MB) + one batch tile: actual footprint ~6-8 MiB;
            # keep well under v7x's 64 MiB physical VMEM.
            vmem_limit_bytes=24 * 1024 * 1024,
        ),
    )(x, m1, c1, m2, c2, m3, c3, wfc, bfc)

    return out[:B, :num_actions]


# ------------------------------- plain-JAX reference ----------------------------------

def reference_forward(state, raw):
    w1, b1, w2, b2, w3, b3, wfc, bfc = raw
    dn = ('NCHW', 'OIHW', 'NCHW')

    def conv_relu(x, w, b):
        y = lax.conv_general_dilated(x, w, (1, 1), ((1, 1), (1, 1)), dimension_numbers=dn)
        return jnp.maximum(y + b[None, :, None, None], 0.0)

    def pool(x):
        return lax.reduce_window(x, -jnp.inf, lax.max, (1, 1, 2, 2), (1, 1, 1, 1), 'VALID')

    out = conv_relu(state, w1, b1)
    out = pool(conv_relu(out, w2, b2))
    out = pool(conv_relu(out, w3, b3))
    out = out.reshape(out.shape[0], -1)
    return jax.nn.softmax(out @ wfc + bfc[None, :], axis=1)


if __name__ == "__main__":
    B, NUM_ACTIONS = 8, 4

    key = jax.random.PRNGKey(0)
    k_state, k_params = jax.random.split(key)
    state = jax.random.normal(k_state, (B, 1, 4, 4), jnp.float32)

    raw = init_torch_like_params(k_params, NUM_ACTIONS)
    lowered = lower_params(raw, NUM_ACTIONS, pool_base_offset())

    probs = convnet_forward(state, lowered, NUM_ACTIONS)
    probs = jax.block_until_ready(probs)

    ref = reference_forward(state, raw)
    assert probs.shape == (B, NUM_ACTIONS)
    assert bool(jnp.all(jnp.isfinite(probs)))
    assert jnp.allclose(jnp.sum(probs, axis=1), 1.0, atol=3e-3)   # approx reciprocal in softmax
    # bf16 MXU operands + approx reciprocal -> compare against the f32 reference loosely.
    assert jnp.allclose(probs, ref, atol=2e-2)
    print("KERNEL_OK")
</pallas_src>

<mosaic_0001>
module attributes {stable_mosaic.version = 11 : i64} {
  func.func @probe(%arg0: memref<8x128xf32, #tpu.memory_space<vmem>>, %arg1: memref<8x128xf32, #tpu.memory_space<vmem>>) attributes {dimension_semantics = [], scalar_prefetch = 0 : i64, scratch_operands = 0 : i64, tpu.core_type = #tpu.core_type<tc>} {
    %c0 = arith.constant 0 : index
    %c0_0 = arith.constant 0 : index
    %0 = vector.load %arg0[%c0, %c0_0] : memref<8x128xf32, #tpu.memory_space<vmem>>, vector<8x128xf32>
    %c1_i32 = arith.constant 1 : i32
    %1 = tpu.dynamic_rotate %0 by %c1_i32 dim 1 : vector<8x128xf32>, i32 -> vector<8x128xf32>
    %c0_1 = arith.constant 0 : index
    %c0_2 = arith.constant 0 : index
    %2 = vector.load %arg1[%c0_1, %c0_2] : memref<8x128xf32, #tpu.memory_space<vmem>>, vector<8x128xf32>
    tpu.vector_store %arg1[%c0_1, %c0_2], %1 {strides = array<i32>} : memref<8x128xf32, #tpu.memory_space<vmem>>, vector<8x128xf32>,
    return
  }
}

</mosaic_0001>

<bundles_post_ra>
// kernel: tpu_custom_call.1
= control target key start
LH: loop header
LB: loop body
LE: loop exit
PB: predicated region body
PF: predicated region fallthrough
CT: control target
= control target key end

     0   :  { %6 = vsyncpa [#allocation3], 0  ;;  %s128_s0 = inlined_call_operand.hbm [shape: f32[8,128], index: 0, kind: input, shape index: {}]   ;;  %s129_s1 = inlined_call_operand.hbm [shape: f32[8,128], index: 1, kind: output, shape index: {}]  }
   0x1   :  { %7 = vsyncpa [#allocation4], 0  ;;  %s91_s6 = smov [#allocation2]   ;;  %s43_s10 = scalar_lea.hbm %s128_s0, 128 }
   0x2   :  { %s14_s7 = sshll.u32 %s91_s6, 4  ;;  %p44_p0 = scmp.ne.s32.totalorder %s128_s0, %s43_s10  ;;  %s15_s7 = int_to_ptr.vmem [resolvable:$true] %s14_s7 }
   0x3   :  { %p47_p1 = scmp.lt.u32.totalorder %s43_s10, %s128_s0 }
   0x5   :  { %p49_p2 = pnand %p47_p1, %p44_p0 }
   0x7   :  { %52 = shalt.err (!%p49_p2)
}
   0x8   :  { %s53_s15 = scalar_lea.vmem %s15_s7, 128  ;;  %p58_p4 = scmp.lt.s32.totalorder %s15_s7, %s15_s7 }
   0x9   :  { %p54_p3 = scmp.ne.s32.totalorder %s15_s7, %s53_s15  ;;  %p59_p5 = scmp.lt.s32.totalorder %s53_s15, %s53_s15 }
   0xb   :  { %p60_p6 = por %p59_p5, %p58_p4 }
   0xd   :  { %p61_p7 = pnand %p60_p6, %p54_p3 }
   0xf   :  { %64 = shalt.err (!%p61_p7)
}
  0x10   :  { %17 = dma.hbm_to_vmem [thread:$0]  %s128_s0, 128, %s15_s7, [#allocation3]  }
  0x11   :  { %87 = dma.done.wait [#allocation3], 128  }
  0x12   :  { %88 = vsyncadd [#allocation3], 4294967168  ;;  %v21_v0 = vld [vmem:[#allocation2] sm:$0xff]  ;;  %s92_s18 = smov 1   ;;  %s93_s19 = smov [#allocation5]  }
  0x13   :  { %22 = vrot.lane.b32.xlu0 %v21_v0, %s92_s18  ;;  %s31_s20 = sshll.u32 %s93_s19, 4  ;;  %s32_s20 = int_to_ptr.vmem [resolvable:$true] %s31_s20 }
  0x14   :  { %s65_s21 = scalar_lea.vmem %s32_s20, 128  ;;  %p70_p9 = scmp.lt.s32.totalorder %s32_s20, %s32_s20 }
  0x15   :  { %p66_p8 = scmp.ne.s32.totalorder %s32_s20, %s65_s21  ;;  %p71_p10 = scmp.lt.s32.totalorder %s65_s21, %s65_s21 }
  0x17   :  { %p72_p11 = por %p71_p10, %p70_p9 }
  0x19   :  { %p73_p12 = pnand %p72_p11, %p66_p8 }
  0x85   :  { %v23_v1 = vpop.permute.xlu0 %22 }
  0x86   :  { %24 = vst [vmem:[#allocation5] sm:$0xff] %v23_v1 }
  0x87   :  { %76 = shalt.err (!%p73_p12)
}
  0x88   :  { %s77_s0 = scalar_lea.hbm %s129_s1, 128 }
  0x89   :  { %p78_p13 = scmp.ne.s32.totalorder %s129_s1, %s77_s0  ;;  %p81_p0 = scmp.lt.u32.totalorder %s77_s0, %s129_s1 }
  0x8b   :  { %p83_p1 = pnand %p81_p0, %p78_p13 }
  0x8d   :  { %86 = shalt.err (!%p83_p1)
}
  0x8e   :  { %34 = dma.vmem_to_hbm [thread:$0]  %s32_s20, 128, %s129_s1, [#allocation4]  }
  0x8f   :  { %89 = dma.done.wait [#allocation4], 128  }
  0x90   :  { %90 = vsyncadd [#allocation4], 4294967168 }
  0x91   :  { %38 = vsyncpa [#allocation3], 1 }
  0x92   :  { %39 = vsyncpa [#allocation4], 1 }

</bundles_post_ra>
